<compile_context>
chip_gen: v5e
topology: v5e:2x2
jax: 0.10.0
libtpu: 0.0.40
codegen_flags: <defaults>
</compile_context>

<pallas_src>
import functools

import jax
import jax.numpy as jnp
from jax.experimental import pallas as pl
from jax.experimental.pallas import tpu as pltpu

# ---- "globals" config of the original EEGNAS code (small, deterministic) ----
EEG_CHANS = 4        # input feature channels
INPUT_TIME = 16      # input time length
N_CLASSES = 4
BN_EPS = 1e-5

_VMEM = pl.BlockSpec(memory_space=pltpu.MemorySpace.VMEM)

# ----------------- concrete layer grid (hard-coded DAG instance) -----------------
# input -> {conv_a (kt=3,F=8), conv_b (kt=5,F=8)} -> bn_merge (time-fix + concat + BN)
#       -> elu -> maxpool(2,2) -> output_conv('down_to_one') -> softmax -> flatten
# TODO(synk): networkx graph plumbing (all_simple_paths / topological_sort) and random
# architecture sampling are replaced by this fixed, already-sorted DAG instance.
GRID = {
    "input":          dict(preds=[], layer=("input", {})),
    "conv_a":         dict(preds=["input"], layer=("conv", dict(kt=3, F=8))),
    "conv_b":         dict(preds=["input"], layer=("conv", dict(kt=5, F=8))),
    "bn_merge":       dict(preds=["conv_a", "conv_b"], layer=("bn", {})),
    "act":            dict(preds=["bn_merge"], layer=("elu", {})),
    "pool":           dict(preds=["act"], layer=("pool", dict(pt=2, st=2))),
    "output_conv":    dict(preds=["pool"], layer=("conv", dict(kt="down_to_one", F=N_CLASSES))),
    "output_softmax": dict(preds=["output_conv"], layer=("softmax", {})),
    "output_flatten": dict(preds=["output_softmax"], layer=("flatten", {})),
}
SORTED = ["input", "conv_a", "conv_b", "bn_merge", "act", "pool",
          "output_conv", "output_softmax", "output_flatten"]


# ---------------------------- the fused Pallas kernel ----------------------------


def _fused_grid_kernel(x_ref, wc_ref, bc_ref, g_ref, beta_ref, wo_ref, bo_ref, o_ref,
                       *, B, C, T, kt_a, kt_b, f_a, f_b,
                       pool_t, pool_s, t_pool, eps):
    """Whole ModelFromGrid forward for the fixed DAG, everything VMEM-resident."""
    kt_max = max(kt_a, kt_b)
    t_a = T - kt_a + 1                 # conv_a output time
    t_b = T - kt_b + 1                 # conv_b output time
    t_max = max(t_a, t_b)
    t_min = min(t_a, t_b)              # merged time after per-predecessor fixes
    f_m = f_a + f_b                    # merged channel count
    pad = kt_max - min(kt_a, kt_b)     # zero rows so every tap slab spans t_max rows

    wc = wc_ref[...]                   # (kt_max*C, f_m)  combined [conv_a | conv_b] weights
    bc = bc_ref[...]                   # (1, f_m)

    def _time_fix(block, t_full):
        # MaxPool2d((fix+1, 1), stride 1) over time; no-op when fix == 0.
        out = block[0:t_min, :]
        for d in range(1, t_full - t_min + 1):
            out = jnp.maximum(out, block[d:d + t_min, :])
        return out

    merged = []
    for b in range(B):                 # B is tiny -> fully unrolled, everything stays 2-D
        xb = x_ref[b]                  # (T, C): time on sublanes, input chans on lanes
        if pad > 0:
            xb = jnp.concatenate([xb, jnp.zeros((pad, C), jnp.float32)], axis=0)
        # in-kernel im2col, lane index = tap*C + chan.  Zero-padded taps only hit
        # columns whose weights are zero (short kernel) or rows we discard (long kernel),
        # so one GEMM yields BOTH convs at once.
        xcol = jnp.concatenate([xb[k:k + t_max, :] for k in range(kt_max)], axis=1)
        y = jnp.dot(xcol, wc, preferred_element_type=jnp.float32) + bc      # (t_max, f_m)
        fa = _time_fix(y[0:t_a, 0:f_a], t_a)       # conv_a, time-fixed to t_min
        fb = _time_fix(y[0:t_b, f_a:f_m], t_b)     # conv_b, time-fixed to t_min
        merged.append(jnp.concatenate([fa, fb], axis=1))                    # (t_min, f_m)

    # BatchNorm2d: training-mode batch statistics (biased variance), affine.
    # TODO(synk): running-stat (momentum) update of nn.BatchNorm2d is not modeled.
    n = float(B * t_min)
    tot = merged[0].sum(axis=0, keepdims=True)
    for b in range(1, B):
        tot = tot + merged[b].sum(axis=0, keepdims=True)
    mean = tot / n                                                          # (1, f_m)
    centered = [m - mean for m in merged]
    ssq = (centered[0] * centered[0]).sum(axis=0, keepdims=True)
    for b in range(1, B):
        ssq = ssq + (centered[b] * centered[b]).sum(axis=0, keepdims=True)
    scale = jax.lax.rsqrt(ssq / n + eps) * g_ref[...]
    shift = beta_ref[...]

    rows = []
    for b in range(B):
        z = centered[b] * scale + shift                                     # BN affine
        z = jnp.where(z > 0, z, jnp.exp(jnp.minimum(z, 0.0)) - 1.0)         # ELU
        # MaxPool2d((pool_t,1), (pool_s,1)) fused with the flatten that feeds the
        # final 'down_to_one' conv GEMM (lhs lane index = pooled_t*f_m + channel),
        # so no strided stores / separate pool kernel are needed.
        cols = []
        for t in range(t_pool):
            p = z[t * pool_s:t * pool_s + 1, :]
            for d in range(1, pool_t):
                p = jnp.maximum(p, z[t * pool_s + d:t * pool_s + d + 1, :])
            cols.append(p)
        rows.append(jnp.concatenate(cols, axis=1))                          # (1, t_pool*f_m)
    lhs = jnp.concatenate(rows, axis=0)                                     # (B, t_pool*f_m)

    # output_conv (kernel == remaining time) as a GEMM, then softmax(dim=1) + flatten.
    logits = jnp.dot(lhs, wo_ref[...], preferred_element_type=jnp.float32) + bo_ref[...]
    m = jnp.max(logits, axis=1, keepdims=True)
    e = jnp.exp(logits - m)
    o_ref[...] = e / jnp.sum(e, axis=1, keepdims=True)                      # (B, n_classes)


def make_fused_forward(plan):
    """Returns a jitted forward(x, fused_params) -> (B, n_classes)."""
    cfg = dict(C=plan["C"], T=plan["T"],
               kt_a=plan["kt_a"], kt_b=plan["kt_b"],
               f_a=plan["f_a"], f_b=plan["f_b"],
               pool_t=plan["pool_t"], pool_s=plan["pool_s"],
               t_pool=plan["t_pool"], eps=plan["eps"])
    n_classes = plan["n_classes"]

    @jax.jit
    def forward(x, fp):
        x = jnp.asarray(x, jnp.float32)
        B = x.shape[0]
        xt = jnp.transpose(x[..., 0], (0, 2, 1))        # (B, T, C) time-major per batch
        kernel = functools.partial(_fused_grid_kernel, B=B, **cfg)
        # TODO(synk): if B*time ever grows past a few hundred rows, add a row grid with
        # (8,128)-aligned tiles and "parallel" semantics; at B=2 a grid is pure overhead.
        return pl.pallas_call(
            kernel,
            out_shape=jax.ShapeDtypeStruct((B, n_classes), jnp.float32),
            in_specs=[_VMEM] * 7,
            out_specs=_VMEM,
        )(xt, fp["wc"], fp["bc"], fp["gamma"], fp["beta"], fp["wo"], fp["bo"])

    return forward


# ----------------- model construction (mirrors ModelFromGrid.__init__) -----------------


def build_model(key):
    """Shapes / fixes / deterministic params, mirroring ModelFromGrid semantics."""
    shapes = {"input": dict(time=INPUT_TIME, chans=EEG_CHANS)}
    params, fixes, meta = {}, {}, {}
    for node in SORTED[1:]:
        preds = GRID[node]["preds"]
        min_time = int(min(shapes[p]["time"] for p in preds))
        sum_chans = int(sum(shapes[p]["chans"] for p in preds))
        for p in preds:
            fixes[(p, node)] = shapes[p]["time"] - min_time
        kind, cfg = GRID[node]["layer"]
        if kind == "conv":
            kt, F = cfg["kt"], cfg["F"]
            if kt == "down_to_one":
                kt, F = min_time, N_CLASSES
            key, kw, kb = jax.random.split(key, 3)
            fan_in = sum_chans * kt
            if node == "output_conv":
                # xavier_uniform_(gain=1) + zero bias (as in ModelFromGrid.__init__)
                fan_out = F * kt
                bound = (6.0 / (fan_in + fan_out)) ** 0.5
                w = jax.random.uniform(kw, (F, sum_chans, kt, 1), jnp.float32, -bound, bound)
                b = jnp.zeros((F,), jnp.float32)
            else:
                # PyTorch default Conv2d init bound: 1/sqrt(fan_in)
                bound = 1.0 / (fan_in ** 0.5)
                w = jax.random.uniform(kw, (F, sum_chans, kt, 1), jnp.float32, -bound, bound)
                b = jax.random.uniform(kb, (F,), jnp.float32, -bound, bound)
            params[node] = dict(w=w, b=b)
            meta[node] = dict(kind="conv", kt=kt, F=F)
            shapes[node] = dict(time=min_time - kt + 1, chans=F)
        elif kind == "bn":
            params[node] = dict(gamma=jnp.ones((sum_chans,), jnp.float32),
                                beta=jnp.zeros((sum_chans,), jnp.float32))
            meta[node] = dict(kind="bn")
            shapes[node] = dict(time=min_time, chans=sum_chans)
        elif kind == "pool":
            meta[node] = dict(kind="pool", pt=cfg["pt"], st=cfg["st"])
            shapes[node] = dict(time=(min_time - cfg["pt"]) // cfg["st"] + 1, chans=sum_chans)
        else:  # elu / softmax / flatten
            meta[node] = dict(kind=kind)
            shapes[node] = dict(time=min_time, chans=sum_chans)
        if shapes[node]["time"] < 1:
            raise ValueError("illegal model")

    plan = dict(
        C=EEG_CHANS, T=INPUT_TIME,
        kt_a=meta["conv_a"]["kt"], f_a=meta["conv_a"]["F"],
        kt_b=meta["conv_b"]["kt"], f_b=meta["conv_b"]["F"],
        f_merge=shapes["bn_merge"]["chans"],
        t_merge=shapes["bn_merge"]["time"],
        pool_t=meta["pool"]["pt"], pool_s=meta["pool"]["st"],
        t_pool=shapes["pool"]["time"],
        n_classes=N_CLASSES, eps=BN_EPS,
        fix_a=fixes[("conv_a", "bn_merge")], fix_b=fixes[("conv_b", "bn_merge")])
    return params, fixes, meta, shapes, plan


def prepare_fused_params(params, plan):
    """One-time GEMM-layout repack of the weights (cached; never redone per forward)."""
    C = plan["C"]
    kt_a, kt_b = plan["kt_a"], plan["kt_b"]
    kt_max = max(kt_a, kt_b)
    wa = params["conv_a"]["w"][:, :, :, 0]                                  # (f_a, C, kt_a)
    wb = params["conv_b"]["w"][:, :, :, 0]                                  # (f_b, C, kt_b)
    wa = jnp.pad(wa, ((0, 0), (0, 0), (0, kt_max - kt_a)))                  # zero taps >= kt_a
    wb = jnp.pad(wb, ((0, 0), (0, 0), (0, kt_max - kt_b)))
    # row = tap*C + in_chan  (matches in-kernel im2col); cols = [conv_a | conv_b] filters
    wc = jnp.concatenate([wa.transpose(2, 1, 0).reshape(kt_max * C, -1),
                          wb.transpose(2, 1, 0).reshape(kt_max * C, -1)], axis=1)
    bc = jnp.concatenate([params["conv_a"]["b"], params["conv_b"]["b"]])[None, :]
    wo = params["output_conv"]["w"][:, :, :, 0]                             # (n_cls, f_m, t_pool)
    wo = wo.transpose(2, 1, 0).reshape(plan["t_pool"] * plan["f_merge"], -1)  # row = t*f_m + chan
    bo = params["output_conv"]["b"][None, :]
    return dict(wc=wc, bc=bc,
                gamma=params["bn_merge"]["gamma"][None, :],
                beta=params["bn_merge"]["beta"][None, :],
                wo=wo, bo=bo)


# ----------------- pure-JAX reference (mirrors the PyTorch forward) -----------------


def reference_forward(x, params, plan):
    hp = jax.lax.Precision.HIGHEST

    def conv_t(inp, w, b):                     # inp (B,C,T,1), w (F,C,kt,1)
        kt = w.shape[2]
        t_out = inp.shape[2] - kt + 1
        cols = jnp.stack([inp[:, :, k:k + t_out, 0] for k in range(kt)], axis=-1)
        out = jnp.einsum("bctk,fck->bft", cols, w[..., 0], precision=hp)
        return (out + b[None, :, None])[..., None]

    def fixpool(t, fix):                       # MaxPool2d((fix+1,1), stride 1)
        if fix == 0:
            return t
        tm = t.shape[2] - fix
        out = t[:, :, 0:tm]
        for d in range(1, fix + 1):
            out = jnp.maximum(out, t[:, :, d:d + tm])
        return out

    ya = conv_t(x, params["conv_a"]["w"], params["conv_a"]["b"])
    yb = conv_t(x, params["conv_b"]["w"], params["conv_b"]["b"])
    t_min = min(ya.shape[2], yb.shape[2])
    merged = jnp.concatenate([fixpool(ya, ya.shape[2] - t_min),
                              fixpool(yb, yb.shape[2] - t_min)], axis=1)
    mean = merged.mean(axis=(0, 2, 3), keepdims=True)
    var = jnp.mean((merged - mean) ** 2, axis=(0, 2, 3), keepdims=True)
    g = params["bn_merge"]["gamma"][None, :, None, None]
    bb = params["bn_merge"]["beta"][None, :, None, None]
    z = (merged - mean) * jax.lax.rsqrt(var + BN_EPS) * g + bb
    z = jnp.where(z > 0, z, jnp.exp(jnp.minimum(z, 0.0)) - 1.0)
    pt, st = plan["pool_t"], plan["pool_s"]
    t_out = (z.shape[2] - pt) // st + 1
    pooled = jnp.stack([jnp.max(z[:, :, t * st:t * st + pt, 0], axis=2)
                        for t in range(t_out)], axis=2)[..., None]
    logits = conv_t(pooled, params["output_conv"]["w"], params["output_conv"]["b"])
    return jax.nn.softmax(logits, axis=1)[:, :, 0, 0]


if __name__ == "__main__":
    key = jax.random.PRNGKey(0)
    key, kx, kp = jax.random.split(key, 3)
    x = jax.random.normal(kx, (2, EEG_CHANS, INPUT_TIME, 1), jnp.float32)

    params, fixes, meta, shapes, plan = build_model(kp)
    fused_params = prepare_fused_params(params, plan)
    forward = make_fused_forward(plan)

    out = jax.block_until_ready(forward(x, fused_params))
    assert out.shape == (2, N_CLASSES), out.shape

    ref = jax.block_until_ready(reference_forward(x, params, plan))
    assert bool(jnp.allclose(out, ref, atol=5e-3, rtol=0.0)), (out, ref)
    assert bool(jnp.allclose(jnp.sum(out, axis=-1), 1.0, atol=1e-4))
    print("KERNEL_OK")
</pallas_src>

<mosaic_0001>
module attributes {stable_mosaic.version = 11 : i64} {
  func.func @_fused_grid_kernel(%arg0: memref<2x16x4xf32, #tpu.memory_space<vmem>>, %arg1: memref<20x16xf32, #tpu.memory_space<vmem>>, %arg2: memref<1x16xf32, #tpu.memory_space<vmem>>, %arg3: memref<1x16xf32, #tpu.memory_space<vmem>>, %arg4: memref<1x16xf32, #tpu.memory_space<vmem>>, %arg5: memref<96x4xf32, #tpu.memory_space<vmem>>, %arg6: memref<1x4xf32, #tpu.memory_space<vmem>>, %arg7: memref<2x4xf32, #tpu.memory_space<vmem>>) attributes {dimension_semantics = [], scalar_prefetch = 0 : i64, scratch_operands = 0 : i64, tpu.core_type = #tpu.core_type<tc>} {
    %c0 = arith.constant 0 : index
    %c0_0 = arith.constant 0 : index
    %0 = vector.load %arg1[%c0, %c0_0] : memref<20x16xf32, #tpu.memory_space<vmem>>, vector<20x16xf32>
    %c0_1 = arith.constant 0 : index
    %c0_2 = arith.constant 0 : index
    %1 = vector.load %arg2[%c0_1, %c0_2] : memref<1x16xf32, #tpu.memory_space<vmem>>, vector<1x16xf32>
    %c0_3 = arith.constant 0 : index
    %c0_4 = arith.constant 0 : index
    %c0_5 = arith.constant 0 : index
    %2 = vector.load %arg0[%c0_3, %c0_4, %c0_5] : memref<2x16x4xf32, #tpu.memory_space<vmem>>, vector<1x16x4xf32>
    %3 = vector.shape_cast %2 : vector<1x16x4xf32> to vector<16x4xf32>
    %cst = arith.constant 0.000000e+00 : f32
    %4 = vector.broadcast %cst : f32 to vector<2x4xf32>
    %5 = tpu.concatenate %3, %4 in 0 : vector<16x4xf32>, vector<2x4xf32> -> vector<18x4xf32>
    %6 = vector.extract_strided_slice %5 {offsets = [0, 0], sizes = [14, 4], strides = [1, 1]} : vector<18x4xf32> to vector<14x4xf32>
    %7 = vector.extract_strided_slice %5 {offsets = [1, 0], sizes = [14, 4], strides = [1, 1]} : vector<18x4xf32> to vector<14x4xf32>
    %8 = vector.extract_strided_slice %5 {offsets = [2, 0], sizes = [14, 4], strides = [1, 1]} : vector<18x4xf32> to vector<14x4xf32>
    %9 = vector.extract_strided_slice %5 {offsets = [3, 0], sizes = [14, 4], strides = [1, 1]} : vector<18x4xf32> to vector<14x4xf32>
    %10 = vector.extract_strided_slice %5 {offsets = [4, 0], sizes = [14, 4], strides = [1, 1]} : vector<18x4xf32> to vector<14x4xf32>
    %11 = tpu.concatenate %6, %7, %8, %9, %10 in 1 : vector<14x4xf32>, vector<14x4xf32>, vector<14x4xf32>, vector<14x4xf32>, vector<14x4xf32> -> vector<14x20xf32>
    %cst_6 = arith.constant dense<0.000000e+00> : vector<14x16xf32>
    %12 = tpu.matmul %11, %0, %cst_6 {dimension_numbers = #tpu.dot_dimension_numbers<[1], [0], [0], [1], [0, 0, 1, 1], [], []>} : vector<14x20xf32>, vector<20x16xf32>, vector<14x16xf32> -> vector<14x16xf32>
    %13 = vector.broadcast %1 : vector<1x16xf32> to vector<14x16xf32>
    %14 = arith.addf %12, %13 : vector<14x16xf32>
    %15 = vector.extract_strided_slice %14 {offsets = [0, 0], sizes = [14, 8], strides = [1, 1]} : vector<14x16xf32> to vector<14x8xf32>
    %16 = vector.extract_strided_slice %15 {offsets = [0, 0], sizes = [12, 8], strides = [1, 1]} : vector<14x8xf32> to vector<12x8xf32>
    %17 = vector.extract_strided_slice %15 {offsets = [1, 0], sizes = [12, 8], strides = [1, 1]} : vector<14x8xf32> to vector<12x8xf32>
    %18 = arith.maximumf %16, %17 : vector<12x8xf32>
    %19 = vector.extract_strided_slice %15 {offsets = [2, 0], sizes = [12, 8], strides = [1, 1]} : vector<14x8xf32> to vector<12x8xf32>
    %20 = arith.maximumf %18, %19 : vector<12x8xf32>
    %21 = vector.extract_strided_slice %14 {offsets = [0, 8], sizes = [12, 8], strides = [1, 1]} : vector<14x16xf32> to vector<12x8xf32>
    %22 = tpu.concatenate %20, %21 in 1 : vector<12x8xf32>, vector<12x8xf32> -> vector<12x16xf32>
    %c1 = arith.constant 1 : index
    %c0_7 = arith.constant 0 : index
    %c0_8 = arith.constant 0 : index
    %23 = vector.load %arg0[%c1, %c0_7, %c0_8] : memref<2x16x4xf32, #tpu.memory_space<vmem>>, vector<1x16x4xf32>
    %24 = vector.shape_cast %23 : vector<1x16x4xf32> to vector<16x4xf32>
    %cst_9 = arith.constant 0.000000e+00 : f32
    %25 = vector.broadcast %cst_9 : f32 to vector<2x4xf32>
    %26 = tpu.concatenate %24, %25 in 0 : vector<16x4xf32>, vector<2x4xf32> -> vector<18x4xf32>
    %27 = vector.extract_strided_slice %26 {offsets = [0, 0], sizes = [14, 4], strides = [1, 1]} : vector<18x4xf32> to vector<14x4xf32>
    %28 = vector.extract_strided_slice %26 {offsets = [1, 0], sizes = [14, 4], strides = [1, 1]} : vector<18x4xf32> to vector<14x4xf32>
    %29 = vector.extract_strided_slice %26 {offsets = [2, 0], sizes = [14, 4], strides = [1, 1]} : vector<18x4xf32> to vector<14x4xf32>
    %30 = vector.extract_strided_slice %26 {offsets = [3, 0], sizes = [14, 4], strides = [1, 1]} : vector<18x4xf32> to vector<14x4xf32>
    %31 = vector.extract_strided_slice %26 {offsets = [4, 0], sizes = [14, 4], strides = [1, 1]} : vector<18x4xf32> to vector<14x4xf32>
    %32 = tpu.concatenate %27, %28, %29, %30, %31 in 1 : vector<14x4xf32>, vector<14x4xf32>, vector<14x4xf32>, vector<14x4xf32>, vector<14x4xf32> -> vector<14x20xf32>
    %cst_10 = arith.constant dense<0.000000e+00> : vector<14x16xf32>
    %33 = tpu.matmul %32, %0, %cst_10 {dimension_numbers = #tpu.dot_dimension_numbers<[1], [0], [0], [1], [0, 0, 1, 1], [], []>} : vector<14x20xf32>, vector<20x16xf32>, vector<14x16xf32> -> vector<14x16xf32>
    %34 = vector.broadcast %1 : vector<1x16xf32> to vector<14x16xf32>
    %35 = arith.addf %33, %34 : vector<14x16xf32>
    %36 = vector.extract_strided_slice %35 {offsets = [0, 0], sizes = [14, 8], strides = [1, 1]} : vector<14x16xf32> to vector<14x8xf32>
    %37 = vector.extract_strided_slice %36 {offsets = [0, 0], sizes = [12, 8], strides = [1, 1]} : vector<14x8xf32> to vector<12x8xf32>
    %38 = vector.extract_strided_slice %36 {offsets = [1, 0], sizes = [12, 8], strides = [1, 1]} : vector<14x8xf32> to vector<12x8xf32>
    %39 = arith.maximumf %37, %38 : vector<12x8xf32>
    %40 = vector.extract_strided_slice %36 {offsets = [2, 0], sizes = [12, 8], strides = [1, 1]} : vector<14x8xf32> to vector<12x8xf32>
    %41 = arith.maximumf %39, %40 : vector<12x8xf32>
    %42 = vector.extract_strided_slice %35 {offsets = [0, 8], sizes = [12, 8], strides = [1, 1]} : vector<14x16xf32> to vector<12x8xf32>
    %43 = tpu.concatenate %41, %42 in 1 : vector<12x8xf32>, vector<12x8xf32> -> vector<12x16xf32>
    %cst_11 = arith.constant dense<0.000000e+00> : vector<16xf32>
    %44 = vector.multi_reduction <add>, %22, %cst_11 [0] : vector<12x16xf32> to vector<16xf32>
    %45 = vector.shape_cast %44 : vector<16xf32> to vector<1x16xf32>
    %cst_12 = arith.constant dense<0.000000e+00> : vector<16xf32>
    %46 = vector.multi_reduction <add>, %43, %cst_12 [0] : vector<12x16xf32> to vector<16xf32>
    %47 = vector.shape_cast %46 : vector<16xf32> to vector<1x16xf32>
    %48 = arith.addf %45, %47 : vector<1x16xf32>
    %cst_13 = arith.constant 2.400000e+01 : f32
    %49 = vector.broadcast %cst_13 : f32 to vector<1x16xf32>
    %50 = arith.divf %48, %49 : vector<1x16xf32>
    %51 = vector.broadcast %50 : vector<1x16xf32> to vector<12x16xf32>
    %52 = arith.subf %22, %51 : vector<12x16xf32>
    %53 = vector.broadcast %50 : vector<1x16xf32> to vector<12x16xf32>
    %54 = arith.subf %43, %53 : vector<12x16xf32>
    %55 = arith.mulf %52, %52 : vector<12x16xf32>
    %cst_14 = arith.constant dense<0.000000e+00> : vector<16xf32>
    %56 = vector.multi_reduction <add>, %55, %cst_14 [0] : vector<12x16xf32> to vector<16xf32>
    %57 = vector.shape_cast %56 : vector<16xf32> to vector<1x16xf32>
    %58 = arith.mulf %54, %54 : vector<12x16xf32>
    %cst_15 = arith.constant dense<0.000000e+00> : vector<16xf32>
    %59 = vector.multi_reduction <add>, %58, %cst_15 [0] : vector<12x16xf32> to vector<16xf32>
    %60 = vector.shape_cast %59 : vector<16xf32> to vector<1x16xf32>
    %61 = arith.addf %57, %60 : vector<1x16xf32>
    %cst_16 = arith.constant 2.400000e+01 : f32
    %62 = vector.broadcast %cst_16 : f32 to vector<1x16xf32>
    %63 = arith.divf %61, %62 : vector<1x16xf32>
    %cst_17 = arith.constant 9.99999974E-6 : f32
    %64 = vector.broadcast %cst_17 : f32 to vector<1x16xf32>
    %65 = arith.addf %63, %64 : vector<1x16xf32>
    %66 = math.rsqrt %65 : vector<1x16xf32>
    %c0_18 = arith.constant 0 : index
    %c0_19 = arith.constant 0 : index
    %67 = vector.load %arg3[%c0_18, %c0_19] : memref<1x16xf32, #tpu.memory_space<vmem>>, vector<1x16xf32>
    %68 = arith.mulf %66, %67 : vector<1x16xf32>
    %c0_20 = arith.constant 0 : index
    %c0_21 = arith.constant 0 : index
    %69 = vector.load %arg4[%c0_20, %c0_21] : memref<1x16xf32, #tpu.memory_space<vmem>>, vector<1x16xf32>
    %70 = vector.broadcast %68 : vector<1x16xf32> to vector<12x16xf32>
    %71 = arith.mulf %52, %70 : vector<12x16xf32>
    %72 = vector.broadcast %69 : vector<1x16xf32> to vector<12x16xf32>
    %73 = arith.addf %71, %72 : vector<12x16xf32>
    %cst_22 = arith.constant 0.000000e+00 : f32
    %74 = vector.broadcast %cst_22 : f32 to vector<12x16xf32>
    %75 = arith.cmpf ogt, %73, %74 : vector<12x16xf32>
    %cst_23 = arith.constant 0.000000e+00 : f32
    %76 = vector.broadcast %cst_23 : f32 to vector<12x16xf32>
    %77 = arith.minimumf %73, %76 : vector<12x16xf32>
    %78 = math.exp %77 : vector<12x16xf32>
    %cst_24 = arith.constant 1.000000e+00 : f32
    %79 = vector.broadcast %cst_24 : f32 to vector<12x16xf32>
    %80 = arith.subf %78, %79 : vector<12x16xf32>
    %81 = arith.select %75, %73, %80 : vector<12x16xi1>, vector<12x16xf32>
    %82 = vector.extract_strided_slice %81 {offsets = [0, 0], sizes = [1, 16], strides = [1, 1]} : vector<12x16xf32> to vector<1x16xf32>
    %83 = vector.extract_strided_slice %81 {offsets = [1, 0], sizes = [1, 16], strides = [1, 1]} : vector<12x16xf32> to vector<1x16xf32>
    %84 = arith.maximumf %82, %83 : vector<1x16xf32>
    %85 = vector.extract_strided_slice %81 {offsets = [2, 0], sizes = [1, 16], strides = [1, 1]} : vector<12x16xf32> to vector<1x16xf32>
    %86 = vector.extract_strided_slice %81 {offsets = [3, 0], sizes = [1, 16], strides = [1, 1]} : vector<12x16xf32> to vector<1x16xf32>
    %87 = arith.maximumf %85, %86 : vector<1x16xf32>
    %88 = vector.extract_strided_slice %81 {offsets = [4, 0], sizes = [1, 16], strides = [1, 1]} : vector<12x16xf32> to vector<1x16xf32>
    %89 = vector.extract_strided_slice %81 {offsets = [5, 0], sizes = [1, 16], strides = [1, 1]} : vector<12x16xf32> to vector<1x16xf32>
    %90 = arith.maximumf %88, %89 : vector<1x16xf32>
    %91 = vector.extract_strided_slice %81 {offsets = [6, 0], sizes = [1, 16], strides = [1, 1]} : vector<12x16xf32> to vector<1x16xf32>
    %92 = vector.extract_strided_slice %81 {offsets = [7, 0], sizes = [1, 16], strides = [1, 1]} : vector<12x16xf32> to vector<1x16xf32>
    %93 = arith.maximumf %91, %92 : vector<1x16xf32>
    %94 = vector.extract_strided_slice %81 {offsets = [8, 0], sizes = [1, 16], strides = [1, 1]} : vector<12x16xf32> to vector<1x16xf32>
    %95 = vector.extract_strided_slice %81 {offsets = [9, 0], sizes = [1, 16], strides = [1, 1]} : vector<12x16xf32> to vector<1x16xf32>
    %96 = arith.maximumf %94, %95 : vector<1x16xf32>
    %97 = vector.extract_strided_slice %81 {offsets = [10, 0], sizes = [1, 16], strides = [1, 1]} : vector<12x16xf32> to vector<1x16xf32>
    %98 = vector.extract_strided_slice %81 {offsets = [11, 0], sizes = [1, 16], strides = [1, 1]} : vector<12x16xf32> to vector<1x16xf32>
    %99 = arith.maximumf %97, %98 : vector<1x16xf32>
    %100 = tpu.concatenate %84, %87, %90, %93, %96, %99 in 1 : vector<1x16xf32>, vector<1x16xf32>, vector<1x16xf32>, vector<1x16xf32>, vector<1x16xf32>, vector<1x16xf32> -> vector<1x96xf32>
    %101 = vector.broadcast %68 : vector<1x16xf32> to vector<12x16xf32>
    %102 = arith.mulf %54, %101 : vector<12x16xf32>
    %103 = vector.broadcast %69 : vector<1x16xf32> to vector<12x16xf32>
    %104 = arith.addf %102, %103 : vector<12x16xf32>
    %cst_25 = arith.constant 0.000000e+00 : f32
    %105 = vector.broadcast %cst_25 : f32 to vector<12x16xf32>
    %106 = arith.cmpf ogt, %104, %105 : vector<12x16xf32>
    %cst_26 = arith.constant 0.000000e+00 : f32
    %107 = vector.broadcast %cst_26 : f32 to vector<12x16xf32>
    %108 = arith.minimumf %104, %107 : vector<12x16xf32>
    %109 = math.exp %108 : vector<12x16xf32>
    %cst_27 = arith.constant 1.000000e+00 : f32
    %110 = vector.broadcast %cst_27 : f32 to vector<12x16xf32>
    %111 = arith.subf %109, %110 : vector<12x16xf32>
    %112 = arith.select %106, %104, %111 : vector<12x16xi1>, vector<12x16xf32>
    %113 = vector.extract_strided_slice %112 {offsets = [0, 0], sizes = [1, 16], strides = [1, 1]} : vector<12x16xf32> to vector<1x16xf32>
    %114 = vector.extract_strided_slice %112 {offsets = [1, 0], sizes = [1, 16], strides = [1, 1]} : vector<12x16xf32> to vector<1x16xf32>
    %115 = arith.maximumf %113, %114 : vector<1x16xf32>
    %116 = vector.extract_strided_slice %112 {offsets = [2, 0], sizes = [1, 16], strides = [1, 1]} : vector<12x16xf32> to vector<1x16xf32>
    %117 = vector.extract_strided_slice %112 {offsets = [3, 0], sizes = [1, 16], strides = [1, 1]} : vector<12x16xf32> to vector<1x16xf32>
    %118 = arith.maximumf %116, %117 : vector<1x16xf32>
    %119 = vector.extract_strided_slice %112 {offsets = [4, 0], sizes = [1, 16], strides = [1, 1]} : vector<12x16xf32> to vector<1x16xf32>
    %120 = vector.extract_strided_slice %112 {offsets = [5, 0], sizes = [1, 16], strides = [1, 1]} : vector<12x16xf32> to vector<1x16xf32>
    %121 = arith.maximumf %119, %120 : vector<1x16xf32>
    %122 = vector.extract_strided_slice %112 {offsets = [6, 0], sizes = [1, 16], strides = [1, 1]} : vector<12x16xf32> to vector<1x16xf32>
    %123 = vector.extract_strided_slice %112 {offsets = [7, 0], sizes = [1, 16], strides = [1, 1]} : vector<12x16xf32> to vector<1x16xf32>
    %124 = arith.maximumf %122, %123 : vector<1x16xf32>
    %125 = vector.extract_strided_slice %112 {offsets = [8, 0], sizes = [1, 16], strides = [1, 1]} : vector<12x16xf32> to vector<1x16xf32>
    %126 = vector.extract_strided_slice %112 {offsets = [9, 0], sizes = [1, 16], strides = [1, 1]} : vector<12x16xf32> to vector<1x16xf32>
    %127 = arith.maximumf %125, %126 : vector<1x16xf32>
    %128 = vector.extract_strided_slice %112 {offsets = [10, 0], sizes = [1, 16], strides = [1, 1]} : vector<12x16xf32> to vector<1x16xf32>
    %129 = vector.extract_strided_slice %112 {offsets = [11, 0], sizes = [1, 16], strides = [1, 1]} : vector<12x16xf32> to vector<1x16xf32>
    %130 = arith.maximumf %128, %129 : vector<1x16xf32>
    %131 = tpu.concatenate %115, %118, %121, %124, %127, %130 in 1 : vector<1x16xf32>, vector<1x16xf32>, vector<1x16xf32>, vector<1x16xf32>, vector<1x16xf32>, vector<1x16xf32> -> vector<1x96xf32>
    %132 = tpu.concatenate %100, %131 in 0 : vector<1x96xf32>, vector<1x96xf32> -> vector<2x96xf32>
    %c0_28 = arith.constant 0 : index
    %c0_29 = arith.constant 0 : index
    %133 = vector.load %arg5[%c0_28, %c0_29] : memref<96x4xf32, #tpu.memory_space<vmem>>, vector<96x4xf32>
    %cst_30 = arith.constant dense<0.000000e+00> : vector<2x4xf32>
    %134 = tpu.matmul %132, %133, %cst_30 {dimension_numbers = #tpu.dot_dimension_numbers<[1], [0], [0], [1], [0, 0, 1, 1], [], []>} : vector<2x96xf32>, vector<96x4xf32>, vector<2x4xf32> -> vector<2x4xf32>
    %c0_31 = arith.constant 0 : index
    %c0_32 = arith.constant 0 : index
    %135 = vector.load %arg6[%c0_31, %c0_32] : memref<1x4xf32, #tpu.memory_space<vmem>>, vector<1x4xf32>
    %136 = vector.broadcast %135 : vector<1x4xf32> to vector<2x4xf32>
    %137 = arith.addf %134, %136 : vector<2x4xf32>
    %cst_33 = arith.constant dense<0xFF800000> : vector<2xf32>
    %138 = vector.multi_reduction <maximumf>, %137, %cst_33 [1] : vector<2x4xf32> to vector<2xf32>
    %139 = vector.shape_cast %138 : vector<2xf32> to vector<2x1xf32>
    %140 = vector.broadcast %139 : vector<2x1xf32> to vector<2x4xf32>
    %141 = arith.subf %137, %140 : vector<2x4xf32>
    %142 = math.exp %141 : vector<2x4xf32>
    %cst_34 = arith.constant dense<0.000000e+00> : vector<2xf32>
    %143 = vector.multi_reduction <add>, %142, %cst_34 [1] : vector<2x4xf32> to vector<2xf32>
    %144 = vector.shape_cast %143 : vector<2xf32> to vector<2x1xf32>
    %145 = vector.broadcast %144 : vector<2x1xf32> to vector<2x4xf32>
    %146 = arith.divf %142, %145 : vector<2x4xf32>
    %c0_35 = arith.constant 0 : index
    %c0_36 = arith.constant 0 : index
    %147 = vector.load %arg7[%c0_35, %c0_36] : memref<2x4xf32, #tpu.memory_space<vmem>>, vector<2x4xf32>
    tpu.vector_store %arg7[%c0_35, %c0_36], %146 {strides = array<i32>} : memref<2x4xf32, #tpu.memory_space<vmem>>, vector<2x4xf32>,
    return
  }
}

</mosaic_0001>

<bundles_post_ra>
// kernel: forward.1
= control target key start
LH: loop header
LB: loop body
LE: loop exit
PB: predicated region body
PF: predicated region fallthrough
CT: control target
= control target key end

     0   :  { %vm45_vm0 = vcmask 1045504   ;;  %vm35_vm1 = vcmask 1046528   ;;  %s578_s9 = smov 8   ;;  %s579_s10 = smov 4   ;;  %s798_s0 = inlined_call_operand.vmem [shape: f32[2,16,4], index: 0, kind: input, shape index: {}]   ;;  %s799_s1 = inlined_call_operand.vmem [shape: f32[20,16], index: 1, kind: input, shape index: {}]   ;;  %s800_s2 = inlined_call_operand.vmem [shape: f32[1,16], index: 2, kind: input, shape index: {}]   ;;  %s801_s3 = inlined_call_operand.vmem [shape: f32[1,16], index: 3, kind: input, shape index: {}]   ;;  %s802_s4 = inlined_call_operand.vmem [shape: f32[1,16], index: 4, kind: input, shape index: {}]   ;;  %s803_s5 = inlined_call_operand.vmem [shape: f32[96,4], index: 5, kind: input, shape index: {}]   ;;  %s804_s6 = inlined_call_operand.vmem [shape: f32[1,4], index: 6, kind: input, shape index: {}]   ;;  %s805_s7 = inlined_call_operand.hbm [shape: f32[2,4], index: 7, kind: output, shape index: {}]  }
   0x1   :  { %v632_v0 = vld [vmem:[%s798_s0] sm:$0xff]  ;;  %v637_v1 = vld [vmem:[%s798_s0 + $0x8] sm:$0xff]  ;;  %v646_v6 = vld [vmem:[%s798_s0 + $0x10] sm:$0xff] }
   0x2   :  { %v46_v2 = vrot.slane %v632_v0, 2  ;;  %v47_v3 = vrot.slane %v637_v1, 2  ;;  %v36_v4 = vrot.slane %v632_v0, 1  ;;  %v37_v5 = vrot.slane %v637_v1, 1  ;;  %v651_v7 = vld [vmem:[%s798_s0 + $0x18] sm:$0xff] }
   0x3   :  { %v160_v10 = vrot.slane %v646_v6, 2  ;;  %v161_v11 = vrot.slane %v651_v7, 2  ;;  %v151_v12 = vrot.slane %v646_v6, 1 }
   0x4   :  { %v48_v8 = vsel %vm45_vm0, %v46_v2, %v47_v3  ;;  %v38_v9 = vsel %vm35_vm1, %v36_v4, %v37_v5 }
   0x5   :  { %49 = vrot.lane.b32.xlu1 %v48_v8, %s578_s9  ;;  %39 = vrot.lane.b32.xlu0 %v38_v9, %s579_s10 }
   0x6   :  { %12 = vsyncpa [#allocation3], 0  ;;  %v152_v13 = vrot.slane %v651_v7, 1  ;;  %vm56_vm2 = vcmask 1044480   ;;  %v57_v14 = vrot.slane %v632_v0, 3  ;;  %v58_v15 = vrot.slane %v637_v1, 3 }
   0x7   :  { %s580_s0 = smov 12   ;;  %v162_v17 = vsel %vm45_vm0, %v160_v10, %v161_v11  ;;  %v170_v19 = vrot.slane %v651_v7, 3  ;;  %v169_v20 = vrot.slane %v646_v6, 3  ;;  %v179_v21 = vrot.slane %v646_v6, 4  ;;  %s581_s11 = smov 16   ;;  %v28_v36 = vld [vmem:[%s799_s1 + $0x8] sm:$0xff] }
   0x8   :  { %v59_v16 = vsel %vm56_vm2, %v57_v14, %v58_v15  ;;  %v153_v18 = vsel %vm35_vm1, %v151_v12, %v152_v13  ;;  %v180_v22 = vrot.slane %v651_v7, 4  ;;  %v69_v23 = vrot.slane %v632_v0, 4  ;;  %v29_v35 = vld [vmem:[%s799_s1 + $0x10] sm:$0xf]  ;;  %v27_v37 = vld [vmem:[%s799_s1] sm:$0xff]  ;;  %s586_s22 = smov 48  }
   0x9   :  { %62 = vrot.lane.b32.xlu2 %v59_v16, %s580_s0  ;;  %v70_v24 = vrot.slane %v637_v1, 4  ;;  %v171_v25 = vsel %vm56_vm2, %v169_v20, %v170_v19  ;;  %vm68_vm3 = vcmask 1043456   ;;  %v582_v28 = vmov 0.0   ;;  %v533_v8 = vld [vmem:[%s800_s2] ss:$0 sm:$0xff]  ;;  %s587_s23 = smov 80  }
   0xa   :  { %v181_v26 = vsel %vm68_vm3, %v179_v21, %v180_v22  ;;  %v60_v29 = vrot.slane %v582_v28, 3  ;;  %v72_v32 = vrot.slane %v582_v28, 4  ;;  %509 = vmatpush.msk.msra.mxu0 %vm68_vm3, %v29_v35  ;;  %514 = vmatpush.msk.msra.mxu1 %vm68_vm3, %v29_v35  ;;  %vm80_vm4 = vcmask 31744   ;;  %s500_s24 = sshll.u32 %s805_s7, 4  ;;  %s501_s24 = int_to_ptr.hbm [resolvable:$true] %s500_s24 }
   0xb   :  { %v71_v27 = vsel %vm68_vm3, %v69_v23, %v70_v24  ;;  %vm83_vm5 = vcmask 64512   ;;  %vm86_vm6 = vcmask 97280   ;;  %vm89_vm7 = vcmask 130048  }
   0xc   :  { %v172_v30 = vsel %vm56_vm2, %v170_v19, %v60_v29  ;;  %v61_v31 = vsel %vm56_vm2, %v58_v15, %v60_v29  ;;  %v73_v33 = vsel %vm68_vm3, %v70_v24, %v72_v32  ;;  %v182_v34 = vsel %vm68_vm3, %v180_v22, %v72_v32  ;;  %119 = vmatpush.msra.mxu0 %v28_v36 }
   0xd   :  { %163 = vrot.lane.b32.xlu1 %v162_v17, %s578_s9  ;;  %154 = vrot.lane.b32.xlu0 %v153_v18, %s579_s10  ;;  %vm95_vm8 = vcmask 162816   ;;  %vm245_vm9 = vcmask 125952   ;;  %v583_v23 = vmov 24.0   ;;  %vm364_vm2 = vcmask 261120  }
   0xe   :  { %217 = vmatpush.msra.mxu1 %v28_v36  ;;  %120 = vmatpush.msra.mxu0 %v27_v37  ;;  %536 = vrcp.f32 %v583_v23  ;;  %vm366_vm3 = vcmask 392192  }
  0x10   :  { %218 = vmatpush.msra.mxu1 %v27_v37 }
  0x11   :  { %173 = vrot.lane.b32.xlu2 %v171_v25, %s580_s0 }
  0x14   :  { %v537_v37 = vpop.eup %536 }
  0x15   :  { %183 = vrot.lane.b32.xlu1 %v181_v26, %s581_s11  ;;  %74 = vrot.lane.b32.xlu0 %v71_v27, %s581_s11  ;;  %vm269_vm10 = vweird.f32 %v537_v37 }
  0x19   :  { %41 = vrot.lane.b32.xlu2 %v37_v5, %s579_s10 }
  0x1d   :  { %51 = vrot.lane.b32.xlu1 %v47_v3, %s578_s9  ;;  %156 = vrot.lane.b32.xlu0 %v152_v13, %s579_s10 }
  0x21   :  { %165 = vrot.lane.b32.xlu2 %v161_v11, %s578_s9 }
  0x25   :  { %175 = vrot.lane.b32.xlu1 %v172_v30, %s580_s0  ;;  %64 = vrot.lane.b32.xlu0 %v61_v31, %s580_s0 }
  0x29   :  { %76 = vrot.lane.b32.xlu2 %v73_v33, %s581_s11 }
  0x2d   :  { %185 = vrot.lane.b32.xlu0 %v182_v34, %s581_s11 }
  0x63   :  { %v63_v38 = vpop.permute.xlu2 %62 }
  0x6b   :  { %v174_v41 = vpop.permute.xlu2 %173 }
  0x73   :  { %v42_v46 = vpop.permute.xlu2 %41 }
  0x74   :  { %v82_v58 = vsel %vm80_vm4, %v637_v1, %v42_v46 }
  0x77   :  { %v50_v39 = vpop.permute.xlu1 %49  ;;  %v40_v40 = vpop.permute.xlu0 %39 }
  0x78   :  { %v81_v44 = vsel %vm80_vm4, %v632_v0, %v40_v40 }
  0x79   :  { %v84_v47 = vsel %vm83_vm5, %v81_v44, %v50_v39 }
  0x7a   :  { %v87_v49 = vsel %vm86_vm6, %v84_v47, %v63_v38 }
  0x7b   :  { %v166_v55 = vpop.permute.xlu2 %165 }
  0x7f   :  { %v164_v42 = vpop.permute.xlu1 %163  ;;  %v155_v43 = vpop.permute.xlu0 %154 }
  0x80   :  { %v189_v45 = vsel %vm80_vm4, %v646_v6, %v155_v43 }
  0x81   :  { %v191_v48 = vsel %vm83_vm5, %v189_v45, %v164_v42  ;;  %v265_v45 = vmul.f32 24.0, %v537_v37 }
  0x82   :  { %v193_v50 = vsel %vm86_vm6, %v191_v48, %v174_v41 }
  0x83   :  { %v77_v59 = vpop.permute.xlu2 %76 }
  0x87   :  { %v184_v51 = vpop.permute.xlu1 %183  ;;  %v75_v52 = vpop.permute.xlu0 %74 }
  0x88   :  { %v90_v53 = vsel %vm89_vm7, %v87_v49, %v75_v52  ;;  %v195_v54 = vsel %vm89_vm7, %v193_v50, %v184_v51  ;;  %v266_v51 = vsub.f32 1.0, %v265_v45 }
  0x89   :  { %510 = vmatmul.msk.f32.vlgmr.msra.gmra.mxu0 %vm95_vm8, %v90_v53  ;;  %515 = vmatmul.msk.f32.vlgmr.msra.gmra.mxu1 %vm95_vm8, %v195_v54 }
  0x8f   :  { %v157_v56 = vpop.permute.xlu0 %156  ;;  %v52_v57 = vpop.permute.xlu1 %51 }
  0x90   :  { %v85_v60 = vsel %vm83_vm5, %v82_v58, %v52_v57  ;;  %v190_v0 = vsel %vm80_vm4, %v651_v7, %v157_v56  ;;  %vm368_vm4 = vcmask 523264  }
  0x91   :  { %v192_v3 = vsel %vm83_vm5, %v190_v0, %v166_v55  ;;  %v267_v55 = vmul.f32 %v537_v37, %v266_v51 }
  0x97   :  { %v65_v61 = vpop.permute.xlu0 %64  ;;  %v176_v2 = vpop.permute.xlu1 %175 }
  0x98   :  { %v88_v62 = vsel %vm86_vm6, %v85_v60, %v65_v61  ;;  %v194_v4 = vsel %vm86_vm6, %v192_v3, %v176_v2  ;;  %vm425_vm6 = vcmask 1040384  }
  0x99   :  { %v91_v63 = vsel %vm89_vm7, %v88_v62, %v77_v59  ;;  %v268_v59 = vadd.f32 %v537_v37, %v267_v55 }
  0x9a   :  { %511 = vmatmul.msk.f32.gmra.mxu0 %vm95_vm8, %v91_v63 }
  0x9b   :  { %v270_v63 = vsel %vm269_vm10, %v537_v37, %v268_v59  ;;  %v311_v37 = vld [vmem:[%s801_s3] sm:$0x1]  ;;  %s584_s3 = smov 64  }
  0x9f   :  { %v186_v5 = vpop.permute.xlu0 %185 }
  0xa0   :  { %v196_v1 = vsel %vm89_vm7, %v194_v4, %v186_v5 }
  0xa1   :  { %516 = vmatmul.msk.f32.gmra.mxu1 %vm95_vm8, %v196_v1  ;;  %vm443_vm8 = vcmask 785408  }
 0x106   :  { %v122_v6 = vpop.f32.mrf.mxu0  ;;  %v220_v10 = vpop.f32.mrf.mxu1 }
 0x107   :  { %v123_v9 = vadd.f32 %v533_v8, %v122_v6  ;;  %v221_v16 = vadd.f32 %v533_v8, %v220_v10 }
 0x109   :  { %v130_v7 = vrot.slane %v123_v9, 1  ;;  %v137_v15 = vrot.slane %v123_v9, 2  ;;  %v228_v26 = vrot.slane %v221_v16, 1  ;;  %v235_v33 = vrot.slane %v221_v16, 2 }
 0x117   :  { %v125_v11 = vpop.f32.mrf.mxu0 }
 0x118   :  { %v126_v12 = vadd.f32 %v533_v8, %v125_v11 }
 0x11a   :  { %v131_v13 = vrot.slane %v126_v12, 1  ;;  %v138_v14 = vrot.slane %v126_v12, 2 }
 0x11c   :  { %v132_v17 = vsel %vm35_vm1, %v130_v7, %v131_v13  ;;  %v136_v18 = vmax.f32 %v126_v12, %v131_v13  ;;  %v139_v20 = vsel %vm45_vm0, %v137_v15, %v138_v14 }
 0x11d   :  { %v135_v19 = vmax.f32 %v123_v9, %v132_v17 }
 0x11e   :  { %v143_v21 = vmax.f32 %v136_v18, %v138_v14  ;;  %v223_v22 = vpop.f32.mrf.mxu1 }
 0x11f   :  { %v142_v24 = vmax.f32 %v135_v19, %v139_v20  ;;  %v224_v25 = vadd.f32 %v533_v8, %v223_v22 }
 0x120   :  { %v145_v27 = vsel %vm83_vm5, %v143_v21, %v126_v12 }
 0x121   :  { %v144_v28 = vsel %vm83_vm5, %v142_v24, %v123_v9  ;;  %v246_v29 = vsel %vm245_vm9, %v145_v27, 0.0  ;;  %v229_v30 = vrot.slane %v224_v25, 1  ;;  %v236_v31 = vrot.slane %v224_v25, 2 }
 0x122   :  { %v244_v32 = vsel %vm89_vm7, %v144_v28, 0.0 }
 0x123   :  { %v247_v34 = vadd.f32 %v246_v29, %v244_v32  ;;  %v230_v35 = vsel %vm35_vm1, %v228_v26, %v229_v30  ;;  %v234_v36 = vmax.f32 %v224_v25, %v229_v30  ;;  %v237_v40 = vsel %vm45_vm0, %v235_v33, %v236_v31 }
 0x124   :  { %v233_v38 = vmax.f32 %v221_v16, %v230_v35 }
 0x125   :  { %v248_v39 = vrot.slane %v247_v34, 4  ;;  %v241_v41 = vmax.f32 %v234_v36, %v236_v31 }
 0x126   :  { %v240_v42 = vmax.f32 %v233_v38, %v237_v40 }
 0x127   :  { %v249_v43 = vadd.f32 %v248_v39, %v247_v34  ;;  %v243_v44 = vsel %vm83_vm5, %v241_v41, %v224_v25  ;;  %v534_v41 = vld [vmem:[%s802_s4] ss:$0 sm:$0xff]  ;;  %s585_s4 = smov 32  }
 0x128   :  { %v242_v46 = vsel %vm83_vm5, %v240_v42, %v221_v16  ;;  %v255_v47 = vsel %vm245_vm9, %v243_v44, 0.0  ;;  %vm370_vm5 = vcmask 654336  }
 0x129   :  { %v254_v48 = vsel %vm89_vm7, %v242_v46, 0.0  ;;  %v250_v49 = vrot.slane %v249_v43, 2 }
 0x12a   :  { %v256_v50 = vadd.f32 %v255_v47, %v254_v48 }
 0x12b   :  { %v251_v53 = vadd.f32 %v250_v49, %v249_v43 }
 0x12c   :  { %v257_v52 = vrot.slane %v256_v50, 4 }
 0x12d   :  { %v252_v57 = vrot.slane %v251_v53, 1 }
 0x12e   :  { %v258_v54 = vadd.f32 %v257_v52, %v256_v50 }
 0x12f   :  { %v253_v61 = vadd.f32 %v252_v57, %v251_v53 }
 0x130   :  { %v259_v56 = vrot.slane %v258_v54, 2 }
 0x132   :  { %v260_v58 = vadd.f32 %v259_v56, %v258_v54 }
 0x134   :  { %v261_v60 = vrot.slane %v260_v58, 1 }
 0x136   :  { %v262_v62 = vadd.f32 %v261_v60, %v260_v58 }
 0x138   :  { %v263_v0 = vadd.f32 %v262_v62, %v253_v61 }
 0x13a   :  { %v271_v2 = vmul.f32 %v270_v63, %v263_v0 }
 0x13c   :  { %v272_v3 = vsub.f32 %v144_v28, %v271_v2  ;;  %v273_v4 = vsub.f32 %v145_v27, %v271_v2  ;;  %v274_v5 = vsub.f32 %v242_v46, %v271_v2  ;;  %v275_v1 = vsub.f32 %v243_v44, %v271_v2 }
 0x13e   :  { %v276_v6 = vmul.f32 %v272_v3, %v272_v3  ;;  %v277_v8 = vmul.f32 %v273_v4, %v273_v4  ;;  %v287_v9 = vmul.f32 %v274_v5, %v274_v5  ;;  %v288_v10 = vmul.f32 %v275_v1, %v275_v1 }
 0x140   :  { %v278_v11 = vsel %vm89_vm7, %v276_v6, 0.0  ;;  %v279_v12 = vsel %vm245_vm9, %v277_v8, 0.0  ;;  %v289_v7 = vsel %vm89_vm7, %v287_v9, 0.0  ;;  %v290_v13 = vsel %vm245_vm9, %v288_v10, 0.0 }
 0x141   :  { %v280_v14 = vadd.f32 %v279_v12, %v278_v11  ;;  %v291_v15 = vadd.f32 %v290_v13, %v289_v7 }
 0x143   :  { %v281_v16 = vrot.slane %v280_v14, 4  ;;  %v292_v17 = vrot.slane %v291_v15, 4 }
 0x145   :  { %v282_v18 = vadd.f32 %v281_v16, %v280_v14  ;;  %v293_v19 = vadd.f32 %v292_v17, %v291_v15 }
 0x147   :  { %v283_v20 = vrot.slane %v282_v18, 2  ;;  %v294_v21 = vrot.slane %v293_v19, 2 }
 0x149   :  { %v284_v22 = vadd.f32 %v283_v20, %v282_v18  ;;  %v295_v23 = vadd.f32 %v294_v21, %v293_v19 }
 0x14b   :  { %v285_v24 = vrot.slane %v284_v22, 1  ;;  %v296_v25 = vrot.slane %v295_v23, 1 }
 0x14d   :  { %v286_v26 = vadd.f32 %v285_v24, %v284_v22  ;;  %v297_v27 = vadd.f32 %v296_v25, %v295_v23  ;;  %v438_v22 = vld [vmem:[%s803_s5 + $0x58] sm:$0xff]  ;;  %v437_v23 = vld [vmem:[%s803_s5 + $0x50] sm:$0xff]  ;;  %v436_v24 = vld [vmem:[%s803_s5 + $0x48] sm:$0xff] }
 0x14e   :  { %451 = vmatpush.msra.mxu2 %v438_v22  ;;  %v435_v25 = vld [vmem:[%s803_s5 + $0x40] sm:$0xff] }
 0x14f   :  { %v298_v28 = vadd.f32 %v297_v27, %v286_v26  ;;  %v434_v26 = vld [vmem:[%s803_s5 + $0x38] sm:$0xff]  ;;  %v433_v27 = vld [vmem:[%s803_s5 + $0x30] sm:$0xff] }
 0x150   :  { %452 = vmatpush.msra.mxu2 %v437_v23 }
 0x151   :  { %v299_v29 = vmul.f32 %v298_v28, %v270_v63  ;;  %v432_v28 = vld [vmem:[%s803_s5 + $0x28] sm:$0xff] }
 0x152   :  { %453 = vmatpush.msra.mxu2 %v436_v24 }
 0x153   :  { %v300_v30 = vadd.f32 1e-05, %v299_v29  ;;  %v431_v29 = vld [vmem:[%s803_s5 + $0x20] sm:$0xff] }
 0x154   :  { %454 = vmatpush.msra.mxu2 %v435_v25 }
 0x155   :  { %538 = vrsqrt.f32 %v300_v30  ;;  %vm307_vm12 = vweird.f32 %v300_v30 }
 0x156   :  { %455 = vmatpush.msra.mxu2 %v434_v26 }
 0x158   :  { %456 = vmatpush.msra.mxu2 %v433_v27 }
 0x15a   :  { %457 = vmatpush.msra.mxu2 %v432_v28 }
 0x15b   :  { %v539_v31 = vpop.eup %538 }
 0x15c   :  { %v302_v32 = vmul.f32 %v539_v31, %v300_v30  ;;  %vm308_vm11 = vweird.f32 %v539_v31  ;;  %v430_v30 = vld [vmem:[%s803_s5 + $0x18] sm:$0xff]  ;;  %458 = vmatpush.msra.mxu2 %v431_v29 }
 0x15d   :  { %vm309_vm13 = vmor %vm307_vm12, %vm308_vm11 }
 0x15e   :  { %v303_v33 = vmul.f32 %v539_v31, %v302_v32  ;;  %459 = vmatpush.msra.mxu2 %v430_v30  ;;  %v428_v32 = vld [vmem:[%s803_s5 + $0x8] sm:$0xff] }
 0x160   :  { %v304_v34 = vmul.f32 0.5, %v303_v33  ;;  %v427_v33 = vld [vmem:[%s803_s5] sm:$0xff] }
 0x162   :  { %v305_v35 = vsub.f32 1.5, %v304_v34 }
 0x164   :  { %v306_v36 = vmul.f32 %v539_v31, %v305_v35 }
 0x166   :  { %v310_v38 = vsel %vm309_vm13, %v539_v31, %v306_v36  ;;  %v429_v31 = vld [vmem:[%s803_s5 + $0x10] sm:$0xff] }
 0x167   :  { %v312_v39 = vmul.f32 %v311_v37, %v310_v38  ;;  %460 = vmatpush.msra.mxu2 %v429_v31 }
 0x169   :  { %v314_v40 = vperm.slane %v312_v39, 0  ;;  %461 = vmatpush.msra.mxu2 %v428_v32 }
 0x16b   :  { %v372_v42 = vmul.f32 %v314_v40, %v274_v5  ;;  %v373_v43 = vmul.f32 %v314_v40, %v275_v1  ;;  %v315_v44 = vmul.f32 %v314_v40, %v272_v3  ;;  %v316_v45 = vmul.f32 %v314_v40, %v273_v4  ;;  %462 = vmatpush.msra.mxu2 %v427_v33 }
 0x16d   :  { %v375_v46 = vadd.f32 %v534_v41, %v373_v43  ;;  %v374_v47 = vadd.f32 %v534_v41, %v372_v42  ;;  %v320_v48 = vadd.f32 %v534_v41, %v315_v44  ;;  %v321_v51 = vadd.f32 %v534_v41, %v316_v45 }
 0x16f   :  { %v379_v49 = vmin.f32 %v375_v46, 0.0  ;;  %v378_v50 = vmin.f32 %v374_v47, 0.0  ;;  %v324_v52 = vmin.f32 %v320_v48, 0.0  ;;  %v325_v56 = vmin.f32 %v321_v51, 0.0 }
 0x170   :  { %vm377_vm14 = vcmp.gt.f32.partialorder %v375_v46, 0.0  ;;  %vm376_vm15 = vcmp.gt.f32.partialorder %v374_v47, 0.0  ;;  %vm322_vm0 = vcmp.gt.f32.partialorder %v320_v48, 0.0  ;;  %vm323_vm1 = vcmp.gt.f32.partialorder %v321_v51, 0.0 }
 0x171   :  { %v382_v53 = vmul.f32 1.442695, %v379_v49  ;;  %v380_v54 = vmul.f32 1.442695, %v378_v50  ;;  %v326_v55 = vmul.f32 1.442695, %v324_v52 }
 0x172   :  { %v328_v57 = vmul.f32 1.442695, %v325_v56  ;;  %v535_v56 = vld [vmem:[%s804_s6] ss:$0 sm:$0xff]  ;;  %s588_s6 = smov [#allocation2]  }
 0x173   :  { %540 = vpow2.f32 %v382_v53 }
 0x174   :  { %542 = vpow2.f32 %v380_v54 }
 0x175   :  { %544 = vpow2.f32 %v326_v55 }
 0x176   :  { %546 = vpow2.f32 %v328_v57 }
 0x179   :  { %v541_v58 = vpop.eup %540 }
 0x17a   :  { %v543_v59 = vpop.eup %542  ;;  %v520_v60 = vadd.f32 -1.0, %v541_v58 }
 0x17b   :  { %v545_v61 = vpop.eup %544  ;;  %v519_v62 = vadd.f32 -1.0, %v543_v59 }
 0x17c   :  { %v387_v63 = vsel %vm377_vm14, %v375_v46, %v520_v60  ;;  %v517_v0 = vadd.f32 -1.0, %v545_v61  ;;  %v547_v9 = vpop.eup %546 }
 0x17d   :  { %v393_v2 = vrot.slane %v387_v63, 1  ;;  %v386_v3 = vsel %vm376_vm15, %v374_v47, %v519_v62  ;;  %v518_v7 = vadd.f32 -1.0, %v547_v9 }
 0x17e   :  { %v389_v4 = vrot.slane %v386_v3, 1  ;;  %v332_v5 = vsel %vm322_vm0, %v320_v48, %v517_v0 }
 0x17f   :  { %v395_v1 = vmax.f32 %v387_v63, %v393_v2  ;;  %v335_v6 = vrot.slane %v332_v5, 1  ;;  %v333_v14 = vsel %vm323_vm1, %v321_v51, %v518_v7 }
 0x180   :  { %v391_v8 = vmax.f32 %v386_v3, %v389_v4  ;;  %v339_v17 = vrot.slane %v333_v14, 1 }
 0x181   :  { %410 = vrot.lane.b32.xlu0 %v395_v1, %s584_s3  ;;  %v337_v12 = vmax.f32 %v332_v5, %v335_v6  ;;  %v413_v20 = vrot.slane %v395_v1, 2 }
 0x182   :  { %v401_v10 = vrot.slane %v391_v8, 4  ;;  %v397_v11 = vrot.slane %v391_v8, 2  ;;  %v405_v15 = vrot.slane %v391_v8, 6  ;;  %v341_v18 = vmax.f32 %v333_v14, %v339_v17 }
 0x183   :  { %v343_v13 = vrot.slane %v337_v12, 2  ;;  %v347_v16 = vrot.slane %v337_v12, 4  ;;  %v351_v19 = vrot.slane %v337_v12, 6 }
 0x184   :  { %402 = vrot.lane.b32.xlu2 %v401_v10, %s585_s4  ;;  %398 = vrot.lane.b32.xlu1 %v397_v11, %s581_s11  ;;  %v359_v21 = vrot.slane %v341_v18, 2 }
 0x189   :  { %344 = vrot.lane.b32.xlu0 %v343_v13, %s581_s11 }
 0x18c   :  { %406 = vrot.lane.b32.xlu1 %v405_v15, %s586_s22  ;;  %348 = vrot.lane.b32.xlu2 %v347_v16, %s585_s4  ;;  %s498_s4 = sshll.u32 %s588_s6, 4  ;;  %s499_s4 = int_to_ptr.vmem [resolvable:$true] %s498_s4 }
 0x191   :  { %356 = vrot.lane.b32.xlu0 %v341_v18, %s584_s3 }
 0x194   :  { %352 = vrot.lane.b32.xlu1 %v351_v19, %s586_s22  ;;  %414 = vrot.lane.b32.xlu2 %v413_v20, %s587_s23 }
 0x19c   :  { %360 = vrot.lane.b32.xlu1 %v359_v21, %s587_s23 }
 0x1de   :  { %v403_v34 = vpop.permute.xlu2 %402 }
 0x1e6   :  { %v349_v38 = vpop.permute.xlu2 %348 }
 0x1ee   :  { %v415_v46 = vpop.permute.xlu2 %414 }
 0x1f3   :  { %v411_v36 = vpop.permute.xlu0 %410 }
 0x1f6   :  { %v399_v35 = vpop.permute.xlu1 %398 }
 0x1f7   :  { %v417_v39 = vsel %vm89_vm7, %v391_v8, %v399_v35 }
 0x1f8   :  { %v418_v41 = vsel %vm364_vm2, %v417_v39, %v403_v34 }
 0x1fb   :  { %v345_v40 = vpop.permute.xlu0 %344 }
 0x1fc   :  { %v363_v44 = vsel %vm89_vm7, %v337_v12, %v345_v40  ;;  %vm467_vm7 = vcmask 25600  }
 0x1fd   :  { %v365_v47 = vsel %vm364_vm2, %v363_v44, %v349_v38 }
 0x1fe   :  { %v407_v37 = vpop.permute.xlu1 %406 }
 0x1ff   :  { %v419_v42 = vsel %vm366_vm3, %v418_v41, %v407_v37 }
 0x200   :  { %v420_v45 = vsel %vm368_vm4, %v419_v42, %v411_v36 }
 0x201   :  { %v421_v49 = vsel %vm370_vm5, %v420_v45, %v415_v46 }
 0x202   :  { %v423_v53 = vrot.slane %v421_v49, 7 }
 0x203   :  { %v357_v50 = vpop.permute.xlu0 %356 }
 0x206   :  { %v353_v43 = vpop.permute.xlu1 %352 }
 0x207   :  { %v367_v48 = vsel %vm366_vm3, %v365_v47, %v353_v43 }
 0x208   :  { %v369_v52 = vsel %vm368_vm4, %v367_v48, %v357_v50 }
 0x20e   :  { %v361_v51 = vpop.permute.xlu1 %360 }
 0x20f   :  { %v371_v54 = vsel %vm370_vm5, %v369_v52, %v361_v51 }
 0x210   :  { %v426_v55 = vsel %vm425_vm6, %v371_v54, %v423_v53 }
 0x211   :  { %521 = vmatmul.msk.f32.vlgmr.msra.gmra.mxu2 %vm443_vm8, %v426_v55 }
 0x294   :  { %v464_v57 = vpop.f32.mrf.mxu2 }
 0x295   :  { %v465_v58 = vadd.f32 %v535_v56, %v464_v57 }
 0x297   :  { %v468_v59 = vsel %vm467_vm7, %v465_v58, -inf }
 0x298   :  { %469 = vmax.xlane.f32.xlu2 %v468_v59 }
 0x30b   :  { %v470_v60 = vpop.xlane.xlu2 %469 }
 0x30c   :  { %v471_v61 = vsub.f32 %v465_v58, %v470_v60 }
 0x30e   :  { %v472_v62 = vmul.f32 1.442695, %v471_v61 }
 0x310   :  { %548 = vpow2.f32 %v472_v62 }
 0x316   :  { %v549_v63 = vpop.eup %548 }
 0x317   :  { %v474_v0 = vsel %vm467_vm7, %v549_v63, 0.0 }
 0x318   :  { %475 = vadd.xlane.f32.xlu0 %v474_v0 }
 0x38b   :  { %v476_v2 = vpop.xlane.xlu0 %475 }
 0x38c   :  { %550 = vrcp.f32 %v476_v2  ;;  %v488_v1 = vand.u32 2147483648, %v476_v2  ;;  %v486_v8 = vand.u32 2147483647, %v476_v2  ;;  %vm482_vm10 = vweird.f32 %v476_v2 }
 0x38e   :  { %v489_v10 = vor.u32 1.1754944e-38, %v488_v1  ;;  %vm487_vm12 = vcmp.eq.f32.partialorder %v486_v8, 8.507059e+37 }
 0x392   :  { %v551_v3 = vpop.eup %550 }
 0x393   :  { %v478_v4 = vmul.f32 %v551_v3, %v476_v2  ;;  %vm483_vm9 = vweird.f32 %v551_v3 }
 0x394   :  { %vm484_vm11 = vmor %vm482_vm10, %vm483_vm9 }
 0x395   :  { %v479_v5 = vsub.f32 1.0, %v478_v4 }
 0x397   :  { %v480_v6 = vmul.f32 %v551_v3, %v479_v5 }
 0x399   :  { %v481_v9 = vadd.f32 %v551_v3, %v480_v6 }
 0x39b   :  { %v485_v11 = vsel %vm484_vm11, %v551_v3, %v481_v9 }
 0x39c   :  { %v490_v12 = vsel %vm487_vm12, %v489_v10, %v485_v11 }
 0x39d   :  { %v491_v7 = vmul.f32 %v549_v63, %v490_v12 }
 0x39f   :  { %492 = vst.msk [vmem:[#allocation2] sm:$0x3] %vm467_vm7, %v491_v7 }
 0x3a0   :  { %503 = dma.vmem_to_hbm [thread:$0]  %s499_s4, 32, %s501_s24, [#allocation3]  }
 0x3a1   :  { %576 = dma.done.wait [#allocation3], 32  }
 0x3a2   :  { %577 = vsyncadd [#allocation3], 4294967264 }
 0x3a3   :  { %508 = vsyncpa [#allocation3], 1 }

</bundles_post_ra>
